<compile_context>
chip_gen: v7x
topology: tpu7x:2x2x1
jax: 0.10.0
libtpu: 0.0.40
codegen_flags: <defaults>
</compile_context>

<pallas_src>
import functools

import jax
import jax.numpy as jnp
from jax import lax
from jax.experimental import pallas as pl
from jax.experimental.pallas import tpu as pltpu


def _round_up(x, m):
    return (x + m - 1) // m * m


def bow_classifier_kernel(x_ref, w_ref, b_ref, o_ref, acc_ref, *, v_rem):
    # x_ref: (tb, tv), w_ref: (tv, L) (pre-transposed weight), b_ref: (1, L)
    # o_ref: (tb, L), acc_ref: (tb, L) f32 scratch resident across the vocab axis.
    k = pl.program_id(1)
    last_k = pl.num_programs(1) - 1

    @pl.when(k == 0)
    def _init():
        # Fold the bias add into the accumulator init (one broadcast per batch tile).
        acc_ref[...] = jnp.broadcast_to(b_ref[...], acc_ref.shape)

    x = x_ref[...]
    if v_rem:
        # The last vocab tile is a partial edge block: lanes >= v_rem hold
        # uninitialized VMEM (possibly NaN); mask them to exact zero.  The
        # matching weight rows are zero-padded in the wrapper, so the
        # contribution is exactly 0.
        lane = lax.broadcasted_iota(jnp.int32, x.shape, dimension=1)
        is_tail = k == last_k
        x = jnp.where(jnp.logical_and(is_tail, lane >= v_rem), jnp.zeros_like(x), x)

    # Partial linear: MXU-native [tb, tv] x [tv, L] matmul, f32 accumulation.
    acc_ref[...] += jnp.dot(x, w_ref[...], preferred_element_type=jnp.float32)

    @pl.when(k == last_k)
    def _finalize():
        logits = acc_ref[...]
        # Numerically stable log_softmax along the label axis.
        m = jnp.max(logits, axis=-1, keepdims=True)
        z = logits - m
        lse = jnp.log(jnp.sum(jnp.exp(z), axis=-1, keepdims=True))
        o_ref[...] = (z - lse).astype(o_ref.dtype)


@functools.partial(jax.jit, static_argnames=("tb", "tv", "compute_dtype"))
def bow_classifier_forward(bow_vec, weight, bias, *, tb=512, tv=4096,
                           compute_dtype=jnp.bfloat16):
    """bow_vec: (B, V), weight: (L, V), bias: (L,) -> log-probs (B, L) f32."""
    B, V = bow_vec.shape
    L, _ = weight.shape

    # Clamp tiles to the problem size, keeping sublane (8) / lane (128) alignment.
    tv = min(tv, _round_up(V, 128))
    tb = min(tb, _round_up(B, 8))
    # v7x megacore: the "parallel" batch axis only helps if it has >= 2 tiles;
    # shrink tb so both TensorCores get work (no effect on single-TC v5e/v6e).
    if -(-B // tb) < 2 and B > 8:
        tb = _round_up(-(-B // 2), 8)

    grid = (pl.cdiv(B, tb), pl.cdiv(V, tv))
    v_rem = V % tv  # static tail width of the last vocab tile (0 => divisible)

    # Stream x in compute_dtype (bf16 halves HBM bytes; bag-of-words counts are
    # exact in bf16; accumulation stays f32).  Best when this cast fuses with
    # x's upstream producer.  No full-array pad of x (it would re-stream HBM).
    x = bow_vec.astype(compute_dtype)

    # One-time (L, V) -> (V, L) transpose so the per-step dot needs no weight
    # relayout; zero-pad the vocab axis so the tail tile's weight rows are
    # exact zeros (pairs with the in-kernel x mask).
    Vp = grid[1] * tv
    w = weight.T.astype(compute_dtype)
    if Vp != V:
        w = jnp.pad(w, ((0, Vp - V), (0, 0)))
    bias2d = bias.reshape(1, L).astype(jnp.float32)

    kernel = functools.partial(bow_classifier_kernel, v_rem=v_rem)

    out = pl.pallas_call(
        kernel,
        out_shape=jax.ShapeDtypeStruct((B, L), jnp.float32),
        grid_spec=pltpu.PrefetchScalarGridSpec(
            num_scalar_prefetch=0,
            grid=grid,
            in_specs=[
                # x: new (tb, tv) tile per (batch, vocab) grid point.
                pl.BlockSpec((tb, tv), lambda i, k: (i, k)),
                # W^T: varies only along the vocab axis; re-used across batch tiles.
                pl.BlockSpec((tv, L), lambda i, k: (k, 0)),
                # bias: single tiny tile, resident.
                pl.BlockSpec((1, L), lambda i, k: (0, 0)),
            ],
            # Output tile fixed across the vocab (reduction) axis -> accumulator.
            out_specs=pl.BlockSpec((tb, L), lambda i, k: (i, 0)),
            scratch_shapes=[pltpu.VMEM((tb, L), jnp.float32)],
        ),
        compiler_params=pltpu.CompilerParams(
            dimension_semantics=("parallel", "arbitrary"),
            # Working set at tb=512, tv=4096: ~8 MiB (bf16) / ~17 MiB (f32)
            # double-buffered -- fits v7x's 64 MiB VMEM with headroom.
            vmem_limit_bytes=48 * 1024 * 1024,
        ),
    )(x, w, bias2d)

    return out


def reference_forward(bow_vec, weight, bias):
    logits = bow_vec @ weight.T + bias
    return jax.nn.log_softmax(logits, axis=-1)


if __name__ == "__main__":
    # Small, deterministic shapes consistent with the module's forward.
    batch = 4
    vocab_size = 128
    num_labels = 8

    key = jax.random.PRNGKey(0)
    kx, kw, kb = jax.random.split(key, 3)

    # Synthetic bag-of-words counts and Linear params (nn.Linear default scale).
    bow_vec = jax.random.randint(kx, (batch, vocab_size), 0, 4).astype(jnp.float32)
    bound = 1.0 / jnp.sqrt(jnp.float32(vocab_size))
    weight = jax.random.uniform(
        kw, (num_labels, vocab_size), minval=-bound, maxval=bound, dtype=jnp.float32
    )
    bias = jax.random.uniform(
        kb, (num_labels,), minval=-bound, maxval=bound, dtype=jnp.float32
    )

    ref = reference_forward(bow_vec, weight, bias)

    # Default (bf16-streamed) path.
    out = jax.block_until_ready(bow_classifier_forward(bow_vec, weight, bias))
    assert out.shape == (batch, num_labels)
    assert jnp.allclose(out, ref, atol=3e-2, rtol=3e-2), "bf16 mismatch vs reference"

    # Full-precision path (tight tolerance).
    out_f32 = jax.block_until_ready(
        bow_classifier_forward(bow_vec, weight, bias, compute_dtype=jnp.float32))
    assert jnp.allclose(out_f32, ref, atol=1e-5, rtol=1e-5), "f32 mismatch vs reference"

    # Ragged shapes: exercises unpadded-x tail masking, partial batch tile, and
    # multi-tile grid on both axes (V not a multiple of 128 or tv).
    B2, V2 = 300, 1500
    kx2, kw2, kb2 = jax.random.split(jax.random.PRNGKey(1), 3)
    x2 = jax.random.randint(kx2, (B2, V2), 0, 4).astype(jnp.float32)
    w2 = jax.random.uniform(kw2, (num_labels, V2), minval=-0.05, maxval=0.05,
                            dtype=jnp.float32)
    b2 = jax.random.uniform(kb2, (num_labels,), minval=-0.05, maxval=0.05,
                            dtype=jnp.float32)
    ref2 = reference_forward(x2, w2, b2)

    out2_f32 = jax.block_until_ready(
        bow_classifier_forward(x2, w2, b2, tb=128, tv=512, compute_dtype=jnp.float32))
    assert out2_f32.shape == (B2, num_labels)
    assert jnp.allclose(out2_f32, ref2, atol=1e-4, rtol=1e-4), "tiled f32 mismatch"

    out2_bf16 = jax.block_until_ready(
        bow_classifier_forward(x2, w2, b2, tb=128, tv=512))
    assert jnp.allclose(out2_bf16, ref2, atol=6e-2, rtol=6e-2), "tiled bf16 mismatch"

    print("KERNEL_OK")
</pallas_src>

<mosaic_0001>
module attributes {stable_mosaic.version = 11 : i64} {
  func.func @bow_classifier_kernel(%arg0: i32, %arg1: i32, %arg2: memref<8x128xbf16, #tpu.memory_space<vmem>>, %arg3: memref<128x8xbf16, #tpu.memory_space<vmem>>, %arg4: memref<1x8xf32, #tpu.memory_space<vmem>>, %arg5: memref<8x8xf32, #tpu.memory_space<vmem>>, %arg6: memref<8x8xf32, #tpu.memory_space<vmem>>) attributes {dimension_semantics = [#tpu.dimension_semantics<parallel>, #tpu.dimension_semantics<arbitrary>], iteration_bounds = array<i64: 1, 1>, scalar_prefetch = 0 : i64, scratch_operands = 1 : i64, tpu.core_type = #tpu.core_type<tc>, window_params = [{transform_indices = @transform_0, window_bounds = array<i64: 8, 128>}, {transform_indices = @transform_1, window_bounds = array<i64: 128, 8>}, {pipeline_mode = #tpu.pipeline_mode<synchronous>, transform_indices = @transform_2, window_bounds = array<i64: 1, 8>}, {transform_indices = @transform_3, window_bounds = array<i64: 8, 8>}]} {
    %c0_i32 = arith.constant 0 : i32
    %0 = arith.cmpi eq, %arg1, %c0_i32 : i32
    %1 = arith.extui %0 : i1 to i32
    %c0_i32_0 = arith.constant 0 : i32
    %2 = arith.cmpi ne, %1, %c0_i32_0 : i32
    scf.if %2 {
      %c0_10 = arith.constant 0 : index
      %c0_11 = arith.constant 0 : index
      %12 = vector.load %arg4[%c0_10, %c0_11] : memref<1x8xf32, #tpu.memory_space<vmem>>, vector<1x8xf32>
      %13 = vector.shape_cast %12 : vector<1x8xf32> to vector<1x8xf32>
      %14 = vector.broadcast %13 : vector<1x8xf32> to vector<8x8xf32>
      %c0_12 = arith.constant 0 : index
      %c0_13 = arith.constant 0 : index
      %15 = vector.load %arg6[%c0_12, %c0_13] : memref<8x8xf32, #tpu.memory_space<vmem>>, vector<8x8xf32>
      tpu.vector_store %arg6[%c0_12, %c0_13], %14 {strides = array<i32>} : memref<8x8xf32, #tpu.memory_space<vmem>>, vector<8x8xf32>,
    } else {
    }
    %c0 = arith.constant 0 : index
    %c0_1 = arith.constant 0 : index
    %3 = vector.load %arg2[%c0, %c0_1] : memref<8x128xbf16, #tpu.memory_space<vmem>>, vector<8x128xbf16>
    %c0_2 = arith.constant 0 : index
    %c0_3 = arith.constant 0 : index
    %4 = vector.load %arg6[%c0_2, %c0_3] : memref<8x8xf32, #tpu.memory_space<vmem>>, vector<8x8xf32>
    %c0_4 = arith.constant 0 : index
    %c0_5 = arith.constant 0 : index
    %5 = vector.load %arg3[%c0_4, %c0_5] : memref<128x8xbf16, #tpu.memory_space<vmem>>, vector<128x8xbf16>
    %cst = arith.constant dense<0.000000e+00> : vector<8x8xf32>
    %6 = tpu.matmul %3, %5, %cst {dimension_numbers = #tpu.dot_dimension_numbers<[1], [0], [0], [1], [0, 0, 1, 1], [], []>} : vector<8x128xbf16>, vector<128x8xbf16>, vector<8x8xf32> -> vector<8x8xf32>
    %7 = arith.addf %4, %6 : vector<8x8xf32>
    %c0_6 = arith.constant 0 : index
    %c0_7 = arith.constant 0 : index
    %8 = vector.load %arg6[%c0_6, %c0_7] : memref<8x8xf32, #tpu.memory_space<vmem>>, vector<8x8xf32>
    tpu.vector_store %arg6[%c0_6, %c0_7], %7 {strides = array<i32>} : memref<8x8xf32, #tpu.memory_space<vmem>>, vector<8x8xf32>,
    %c0_i32_8 = arith.constant 0 : i32
    %9 = arith.cmpi eq, %arg1, %c0_i32_8 : i32
    %10 = arith.extui %9 : i1 to i32
    %c0_i32_9 = arith.constant 0 : i32
    %11 = arith.cmpi ne, %10, %c0_i32_9 : i32
    scf.if %11 {
      %c0_10 = arith.constant 0 : index
      %c0_11 = arith.constant 0 : index
      %12 = vector.load %arg6[%c0_10, %c0_11] : memref<8x8xf32, #tpu.memory_space<vmem>>, vector<8x8xf32>
      %cst_12 = arith.constant dense<0xFF800000> : vector<8xf32>
      %13 = vector.multi_reduction <maximumf>, %12, %cst_12 [1] : vector<8x8xf32> to vector<8xf32>
      %14 = vector.shape_cast %13 : vector<8xf32> to vector<8x1xf32>
      %15 = vector.broadcast %14 : vector<8x1xf32> to vector<8x8xf32>
      %16 = arith.subf %12, %15 : vector<8x8xf32>
      %17 = math.exp %16 : vector<8x8xf32>
      %cst_13 = arith.constant dense<0.000000e+00> : vector<8xf32>
      %18 = vector.multi_reduction <add>, %17, %cst_13 [1] : vector<8x8xf32> to vector<8xf32>
      %19 = vector.shape_cast %18 : vector<8xf32> to vector<8x1xf32>
      %20 = math.log %19 : vector<8x1xf32>
      %21 = vector.broadcast %20 : vector<8x1xf32> to vector<8x8xf32>
      %22 = arith.subf %16, %21 : vector<8x8xf32>
      %c0_14 = arith.constant 0 : index
      %c0_15 = arith.constant 0 : index
      %23 = vector.load %arg5[%c0_14, %c0_15] : memref<8x8xf32, #tpu.memory_space<vmem>>, vector<8x8xf32>
      tpu.vector_store %arg5[%c0_14, %c0_15], %22 {strides = array<i32>} : memref<8x8xf32, #tpu.memory_space<vmem>>, vector<8x8xf32>,
    } else {
    }
    return
  }
  func.func @transform_0(%arg0: i32, %arg1: i32) -> (i32, i32) {
    %c0_i32 = arith.constant 0 : i32
    return %arg0, %arg1 : i32, i32
  }
  func.func @transform_1(%arg0: i32, %arg1: i32) -> (i32, i32) {
    %c0_i32 = arith.constant 0 : i32
    %c0_i32_0 = arith.constant 0 : i32
    return %arg1, %c0_i32 : i32, i32
  }
  func.func @transform_2(%arg0: i32, %arg1: i32) -> (i32, i32) {
    %c0_i32 = arith.constant 0 : i32
    %c0_i32_0 = arith.constant 0 : i32
    %c0_i32_1 = arith.constant 0 : i32
    return %c0_i32, %c0_i32_0 : i32, i32
  }
  func.func @transform_3(%arg0: i32, %arg1: i32) -> (i32, i32) {
    %c0_i32 = arith.constant 0 : i32
    %c0_i32_0 = arith.constant 0 : i32
    return %arg0, %c0_i32 : i32, i32
  }
}

</mosaic_0001>

<bundles_post_ra>
// kernel: bow_classifier_forward.1
= control target key start
LH: loop header
LB: loop body
LE: loop exit
PB: predicated region body
PF: predicated region fallthrough
CT: control target
= control target key end

     0   :  { %8 = vsyncpa [#allocation4], 0  ;;  %v263_v1 = vmov 0.0   ;;  %vm264_vm0 = vmmov 0   ;;  %vm27_vm1 = vcmask 64512   ;;  %v54_v9 = vlaneseq  ;;  %s339_s0 = inlined_call_operand.vmem [shape: bf16[4,128], index: 0, kind: input, shape index: {}]   ;;  %s340_s1 = inlined_call_operand.vmem [shape: bf16[128,8], index: 1, kind: input, shape index: {}]   ;;  %s341_s2 = inlined_call_operand.vmem [shape: f32[1,8], index: 2, kind: input, shape index: {}]   ;;  %s342_s3 = inlined_call_operand.hbm [shape: f32[4,8], index: 3, kind: output, shape index: {}]  }
   0x1   :  { %v227_v0 = vld [vmem:[%s340_s1] sm:$0xff]   ;;  %201 = vmatprep.subr.bf16.mxu0 %v263_v1  ;;  %v228_v2 = vld [vmem:[%s340_s1 + $0x8] sm:$0xff]   ;;  %217 = vmatprep.mubr.msk.bf16.mxu0 %vm264_vm0, %v263_v1  ;;  %v229_v3 = vld [vmem:[%s340_s1 + $0x10] sm:$0xff]   ;;  %v265_v7 = vmov 1983009808  }
   0x2   :  { %202 = vmatpush3.bf16.msra.mxu0 %v227_v0  ;;  %v183_v4 = vld [vmem:[%s341_s2] ss:$0 sm:$0xff]  ;;  %v230_v5 = vld [vmem:[%s340_s1 + $0x18] sm:$0xff]   ;;  %v52_v8 = vunpack.c.l.s4 %v265_v7  ;;  %v232_v10 = vld [vmem:[%s340_s1 + $0x28] sm:$0xff]   ;;  %v55_v12 = vshrl.u32 %v54_v9, 7 }
   0x3   :  { %203 = vmatprep.subr.bf16.mxu0 %v263_v1  ;;  %28 = vst.msk [vmem:[#allocation2] sm:$0xff] %vm27_vm1, %v183_v4  ;;  %v231_v6 = vld [vmem:[%s340_s1 + $0x20] sm:$0xff]   ;;  %v233_v13 = vld [vmem:[%s340_s1 + $0x30] sm:$0xff]   ;;  %v234_v18 = vld [vmem:[%s340_s1 + $0x38] sm:$0xff]  }
   0x4   :  { %v53_v11 = vunpack.c.0.s8 %v52_v8  ;;  %v29_v14 = vld [vmem:[%s339_s0] sm:$0x3]  ;;  %v30_v15 = vld [vmem:[%s339_s0 + $0x2] sm:$0x3] }
   0x5   :  { %v50_v16 = vcombine.low %v29_v14, %v30_v15 }
   0x6   :  { %204 = vmatpush3.bf16.msra.mxu0 %v228_v2  ;;  %v56_v17 = vsub.s32 %v53_v11, %v55_v12 }
   0x7   :  { %205 = vmatprep.subr.bf16.mxu0 %v263_v1 }
   0x8   :  { %v57_v19 = vrot.slane %v50_v16, %v56_v17 }
   0xa   :  { %206 = vmatpush3.bf16.msra.mxu0 %v229_v3  ;;  %v31_v20 = vld [vmem:[#allocation2] sm:$0xff] }
   0xb   :  { %207 = vmatprep.subr.bf16.mxu0 %v263_v1 }
   0xe   :  { %208 = vmatpush3.bf16.msra.mxu0 %v230_v5 }
   0xf   :  { %209 = vmatprep.subr.bf16.mxu0 %v263_v1 }
  0x12   :  { %210 = vmatpush3.bf16.msra.mxu0 %v231_v6 }
  0x13   :  { %211 = vmatprep.subr.bf16.mxu0 %v263_v1 }
  0x16   :  { %212 = vmatpush3.bf16.msra.mxu0 %v232_v10 }
  0x17   :  { %213 = vmatprep.subr.bf16.mxu0 %v263_v1 }
  0x1a   :  { %214 = vmatpush3.bf16.msra.mxu0 %v233_v13 }
  0x1b   :  { %215 = vmatprep.subr.bf16.mxu0 %v263_v1 }
  0x1e   :  { %216 = vmatpush3.bf16.msra.mxu0 %v234_v18 }
  0x21   :  { %218 = vmatmul.mubr.bf16.vlgmr.msra.gmra.mrb[0].mxu0 %v57_v19 }
  0xf4   :  { %v141_v21 = vpop.f32.mrb[0].mxu0 }
  0xf5   :  { %v147_v22 = vadd.f32 %v141_v21, %v31_v20  ;;  %v219_v23 = vpop.f32.mrb[1].mxu0 }
  0xf6   :  { %v144_v24 = vpop.f32.mrb[2].mxu0 }
  0xf7   :  { %149 = vst.msk [vmem:[#allocation2] sm:$0xff] %vm27_vm1, %v147_v22  ;;  %v220_v25 = vpop.f32.mrb[3].mxu0 }
  0xfe   :  { %v153_v26 = vld [vmem:[#allocation2] sm:$0xff] }
  0xff   :  { %v154_v27 = vsel %vm27_vm1, %v153_v26, -inf }
 0x100   :  { %155 = vmax.xlane.f32.xlu0 %v154_v27 }
 0x18d   :  { %v156_v28 = vpop.xlane.xlu0 %155 }
 0x18e   :  { %v157_v29 = vsub.f32 %v153_v26, %v156_v28 }
 0x190   :  { %v158_v30 = vmul.f32 1.442695, %v157_v29 }
 0x192   :  { %235 = vpow2.f32 %v158_v30 }
 0x19c   :  { %v236_v31 = vpop.eup %235 }
 0x19d   :  { %v160_v32 = vsel %vm27_vm1, %v236_v31, 0.0 }
 0x19e   :  { %161 = vadd.xlane.f32.xlu0 %v160_v32 }
 0x22b   :  { %v162_v33 = vpop.xlane.xlu0 %161 }
 0x22c   :  { %237 = vlog2.f32 %v162_v33 }
 0x236   :  { %v238_v34 = vpop.eup %237 }
 0x237   :  { %v164_v35 = vmul.f32 0.6931472, %v238_v34 }
 0x239   :  { %v165_v36 = vsub.f32 %v157_v29, %v164_v35 }
 0x23b   :  { %166 = vst.msk [vmem:[#allocation3] sm:$0xff] %vm27_vm1, %v165_v36 }
 0x23c   :  { %171 = vsyncadd [#allocation4], 64  ;;  %s266_s0 = smov [#allocation3]  }
 0x23d   :  { %s172_s1 = sshll.u32 %s266_s0, 4  ;;  %s173_s1 = int_to_ptr.vmem [resolvable:$true] %s172_s1 }
 0x23e   :  { %s239_s6 = scalar_lea.vmem %s173_s1, 64  ;;  %s243_s7 = scalar_lea.vmem %s173_s1, 128 }
 0x23f   :  { %p240_p0 = scmp.ne.s32.totalorder %s173_s1, %s239_s6  ;;  %p244_p1 = scmp.lt.s32.totalorder %s173_s1, %s173_s1 }
 0x240   :  { %p245_p2 = scmp.lt.s32.totalorder %s243_s7, %s239_s6 }
 0x242   :  { %p246_p3 = por %p245_p2, %p244_p1 }
 0x244   :  { %p247_p4 = pnand %p246_p3, %p240_p0 }
 0x246   :  { %250 = shalt.err (!%p247_p4)
}
 0x247   :  { %s251_s10 = scalar_lea.hbm %s342_s3, 64 }
 0x248   :  { %p252_p5 = scmp.ne.s32.totalorder %s342_s3, %s251_s10  ;;  %p255_p6 = scmp.lt.u32.totalorder %s251_s10, %s342_s3 }
 0x24a   :  { %p257_p7 = pnand %p255_p6, %p252_p5 }
 0x24c   :  { %260 = shalt.err (!%p257_p7)
}
 0x24d   :  { %s267_s15 = smov 64   ;;  %s268_s16 = smov 4  }
 0x24e   :  { %178 = dma.vmem_to_hbm [thread:$0]  %s173_s1, 64, %s342_s3, [#allocation4], %s267_s15, %s267_s15, %s268_s16  }
 0x24f   :  { %261 = dma.done.wait [#allocation4], 128  }
 0x250   :  { %262 = vsyncadd [#allocation4], 4294967168 }
 0x251   :  { %182 = vsyncpa [#allocation4], 1 }

</bundles_post_ra>
